<compile_context>
chip_gen: v6e
topology: v6e:2x2x1
jax: 0.10.0
libtpu: 0.0.40
codegen_flags: <defaults>
</compile_context>

<pallas_src>
import jax
import jax.numpy as jnp
import numpy as np
from jax import lax
from jax.experimental import pallas as pl
from jax.experimental.pallas import tpu as pltpu

OBS_DIM = 22
ACT_DIM = 4
IN_DIM = OBS_DIM + ACT_DIM      # 26
HIDDEN = 64
LANE = 128                      # vreg lane width; h/c kept 128 lanes wide
GATE_PAD = 2 * LANE             # 256: four 64-wide gates packed two-per-vreg
OUT_PAD = 128                   # lane-dense output store
SUBLANE = 8

# PyTorch stacks LSTM gates as [i, f, g, o].  Packed 64-lane column slots are
# [f, i, o, g] so that:
#   vreg A = gates[:,   0:128] = [f | i]   (both sigmoid)
#   vreg B = gates[:, 128:256] = [o | g]   (sigmoid | tanh)
#   c_new  = A*c + roll(A*B, 64)           (one XLU roll per step)
#   h_new  = B * tanh(c_new)
_PACK_ORDER = (1, 0, 3, 2)      # pytorch gate index feeding slots (f, i, o, g)


def lstm_kernel(x_ref, wih_ref, whh_ref, bias_ref, wout_ref, bout_ref,
                out_ref, proj_sc):
    T, Bp, I = x_ref.shape
    GP = GATE_PAD

    # ---- Hoisted, non-recurrent input projection (one MXU matmul, bias folded).
    xf = x_ref[...].reshape(T * Bp, I)
    proj = jnp.dot(xf, wih_ref[...], preferred_element_type=jnp.float32)
    proj_sc[...] = (proj + bias_ref[...]).reshape(T, Bp, GP)

    # ---- Lane constants for the [o | g] vreg, hoisted out of the time loop:
    # sigmoid(x) = 0.5*tanh(0.5*x)+0.5 on the o half, plain tanh on the g half
    # -> a single EUP pass plus cheap VPU pre/post scaling.
    lane = lax.broadcasted_iota(jnp.int32, (Bp, LANE), 1)
    is_sig = lane < HIDDEN
    pre = jnp.where(is_sig, 0.5, 1.0).astype(jnp.float32)   # also the post-mul
    padd = jnp.where(is_sig, 0.5, 0.0).astype(jnp.float32)

    # ---- Serial recurrence: one (Bp,128)x(128,256) matmul + 3 EUP passes/step.
    def step(t, carry):
        h, c = carry
        gates = proj_sc[t] + jnp.dot(h, whh_ref[...],
                                     preferred_element_type=jnp.float32)
        a_raw = gates[:, 0:LANE]          # [f | i]
        b_raw = gates[:, LANE:GP]         # [o | g]
        a = 0.5 * jnp.tanh(0.5 * a_raw) + 0.5        # sigmoid(f)|sigmoid(i)
        b = jnp.tanh(pre * b_raw) * pre + padd       # sigmoid(o)|tanh(g)
        ig = pltpu.roll(a * b, 64, axis=1)            # lanes 0:64 <- i*g
        c_new = a * c + ig                            # lanes 0:64 = f*c + i*g
        h_new = b * jnp.tanh(c_new)                   # lanes 0:64 = o*tanh(c)
        # Lanes 64:128 of h/c carry bounded garbage; the matching rows of
        # W_hh / W_out are zero, so it never reaches real outputs.
        return (h_new, c_new)

    h0 = jnp.zeros((Bp, LANE), jnp.float32)
    c0 = jnp.zeros((Bp, LANE), jnp.float32)
    h_last, _ = lax.fori_loop(0, T, step, (h0, c0), unroll=True)

    # ---- Last-step ReLU + output Linear, fused into the same kernel.
    h_relu = jnp.maximum(h_last, 0.0)
    out_ref[...] = (jnp.dot(h_relu, wout_ref[...],
                            preferred_element_type=jnp.float32)
                    + bout_ref[...])


def prepare_params(params):
    """One-time (numpy) weight padding / transposition / gate repacking.

    Keeps the per-call jitted path down to a pad of x plus the pallas_call.
    """
    H = HIDDEN
    w_ih = np.asarray(params["w_ih"], np.float32)          # (4H, I)
    w_hh = np.asarray(params["w_hh"], np.float32)          # (4H, H)
    bias = (np.asarray(params["b_ih"], np.float32)
            + np.asarray(params["b_hh"], np.float32))      # (4H,)
    w_out = np.asarray(params["w_out"], np.float32)        # (22, H)
    b_out = np.asarray(params["b_out"], np.float32)        # (22,)

    wih_pad = np.zeros((IN_DIM, GATE_PAD), np.float32)
    whh_pad = np.zeros((LANE, GATE_PAD), np.float32)       # rows 64:128 zero
    bias_pad = np.zeros((1, GATE_PAD), np.float32)
    for slot, pg in enumerate(_PACK_ORDER):
        col = slice(slot * H, (slot + 1) * H)
        row = slice(pg * H, (pg + 1) * H)
        wih_pad[:, col] = w_ih[row, :].T
        whh_pad[:H, col] = w_hh[row, :].T
        bias_pad[0, col] = bias[row]

    wout_pad = np.zeros((LANE, OUT_PAD), np.float32)       # rows 64:128 zero
    wout_pad[:H, :OBS_DIM] = w_out.T
    bout_pad = np.zeros((1, OUT_PAD), np.float32)
    bout_pad[0, :OBS_DIM] = b_out

    cvt = jnp.asarray
    return {"wih": cvt(wih_pad), "whh": cvt(whh_pad), "bias": cvt(bias_pad),
            "wout": cvt(wout_pad), "bout": cvt(bout_pad)}


@jax.jit
def state_lstm_forward(x, prep):
    """x: (T, B, IN_DIM) f32, prep: prepare_params(...) -> (B, OBS_DIM) f32."""
    T, B, I = x.shape
    assert I == IN_DIM
    Bp = -(-B // SUBLANE) * SUBLANE   # round batch up to f32 sublane multiple

    # Zero-pad batch rows (garbage-free; sliced off at the end).
    x_pad = jnp.zeros((T, Bp, IN_DIM), jnp.float32).at[:, :B, :].set(x)

    vmem = pltpu.MemorySpace.VMEM
    out = pl.pallas_call(
        lstm_kernel,
        out_shape=jax.ShapeDtypeStruct((Bp, OUT_PAD), jnp.float32),
        in_specs=[pl.BlockSpec(memory_space=vmem)] * 6,
        out_specs=pl.BlockSpec(memory_space=vmem),
        scratch_shapes=[pltpu.VMEM((T, Bp, GATE_PAD), jnp.float32)],
    )(x_pad, prep["wih"], prep["whh"], prep["bias"], prep["wout"], prep["bout"])

    return out[:B, :OBS_DIM]


def init_params(key):
    """Deterministic synthetic parameters (PyTorch-style uniform init)."""
    k = jax.random.split(key, 6)
    bound = 1.0 / np.sqrt(HIDDEN)
    u = lambda kk, shape: jax.random.uniform(kk, shape, jnp.float32, -bound, bound)
    return {
        "w_ih": u(k[0], (4 * HIDDEN, IN_DIM)),
        "w_hh": u(k[1], (4 * HIDDEN, HIDDEN)),
        "b_ih": u(k[2], (4 * HIDDEN,)),
        "b_hh": u(k[3], (4 * HIDDEN,)),
        "w_out": u(k[4], (OBS_DIM, HIDDEN)),
        "b_out": u(k[5], (OBS_DIM,)),
    }


def reference_forward(x, params):
    """Pure-JAX reference of the PyTorch forward for validation."""
    H = HIDDEN

    def step(carry, x_t):
        h, c = carry
        gates = (x_t @ params["w_ih"].T + params["b_ih"]
                 + h @ params["w_hh"].T + params["b_hh"])
        i = jax.nn.sigmoid(gates[:, 0 * H:1 * H])
        f = jax.nn.sigmoid(gates[:, 1 * H:2 * H])
        g = jnp.tanh(gates[:, 2 * H:3 * H])
        o = jax.nn.sigmoid(gates[:, 3 * H:4 * H])
        c = f * c + i * g
        h = o * jnp.tanh(c)
        return (h, c), h

    B = x.shape[1]
    h0 = jnp.zeros((B, H), jnp.float32)
    c0 = jnp.zeros((B, H), jnp.float32)
    (_, _), outs = lax.scan(step, (h0, c0), x)
    last = jnp.maximum(outs[-1], 0.0)
    return last @ params["w_out"].T + params["b_out"]


if __name__ == "__main__":
    key = jax.random.PRNGKey(0)
    kp, kx = jax.random.split(key)
    params = init_params(kp)
    prep = prepare_params(params)          # one-time padded-weight cache

    T, B = 8, 2
    x = jax.random.normal(kx, (T, B, IN_DIM), jnp.float32)

    out = state_lstm_forward(x, prep)
    out = jax.block_until_ready(out)

    ref = reference_forward(x, params)
    np.testing.assert_allclose(np.asarray(out), np.asarray(ref),
                               rtol=1e-5, atol=1e-5)
    print("KERNEL_OK")
</pallas_src>

<mosaic_0001>
module attributes {stable_mosaic.version = 11 : i64} {
  func.func @lstm_kernel(%arg0: memref<8x8x26xf32, #tpu.memory_space<vmem>>, %arg1: memref<26x256xf32, #tpu.memory_space<vmem>>, %arg2: memref<128x256xf32, #tpu.memory_space<vmem>>, %arg3: memref<1x256xf32, #tpu.memory_space<vmem>>, %arg4: memref<128x128xf32, #tpu.memory_space<vmem>>, %arg5: memref<1x128xf32, #tpu.memory_space<vmem>>, %arg6: memref<8x128xf32, #tpu.memory_space<vmem>>, %arg7: memref<8x8x256xf32, #tpu.memory_space<vmem>>) attributes {dimension_semantics = [], scalar_prefetch = 0 : i64, scratch_operands = 1 : i64, tpu.core_type = #tpu.core_type<tc>} {
    %c0 = arith.constant 0 : index
    %c0_0 = arith.constant 0 : index
    %c0_1 = arith.constant 0 : index
    %0 = vector.load %arg0[%c0, %c0_0, %c0_1] : memref<8x8x26xf32, #tpu.memory_space<vmem>>, vector<8x8x26xf32>
    %1 = vector.shape_cast %0 : vector<8x8x26xf32> to vector<64x26xf32>
    %c0_2 = arith.constant 0 : index
    %c0_3 = arith.constant 0 : index
    %2 = vector.load %arg1[%c0_2, %c0_3] : memref<26x256xf32, #tpu.memory_space<vmem>>, vector<26x256xf32>
    %cst = arith.constant dense<0.000000e+00> : vector<64x256xf32>
    %3 = tpu.matmul %1, %2, %cst {dimension_numbers = #tpu.dot_dimension_numbers<[1], [0], [0], [1], [0, 0, 1, 1], [], []>} : vector<64x26xf32>, vector<26x256xf32>, vector<64x256xf32> -> vector<64x256xf32>
    %c0_4 = arith.constant 0 : index
    %c0_5 = arith.constant 0 : index
    %4 = vector.load %arg3[%c0_4, %c0_5] : memref<1x256xf32, #tpu.memory_space<vmem>>, vector<1x256xf32>
    %5 = vector.broadcast %4 : vector<1x256xf32> to vector<64x256xf32>
    %6 = arith.addf %3, %5 : vector<64x256xf32>
    %7 = vector.shape_cast %6 : vector<64x256xf32> to vector<8x8x256xf32>
    %c0_6 = arith.constant 0 : index
    %c0_7 = arith.constant 0 : index
    %c0_8 = arith.constant 0 : index
    %8 = vector.load %arg7[%c0_6, %c0_7, %c0_8] : memref<8x8x256xf32, #tpu.memory_space<vmem>>, vector<8x8x256xf32>
    tpu.vector_store %arg7[%c0_6, %c0_7, %c0_8], %7 {strides = array<i32>} : memref<8x8x256xf32, #tpu.memory_space<vmem>>, vector<8x8x256xf32>,
    %9 = tpu.iota {dimensions = array<i32: 1>} : vector<8x128xi32>
    %c64_i32 = arith.constant 64 : i32
    %10 = vector.broadcast %c64_i32 : i32 to vector<8x128xi32>
    %11 = arith.cmpi slt, %9, %10 : vector<8x128xi32>
    %cst_9 = arith.constant 5.000000e-01 : f32
    %cst_10 = arith.constant 1.000000e+00 : f32
    %12 = vector.broadcast %cst_9 : f32 to vector<8x128xf32>
    %13 = vector.broadcast %cst_10 : f32 to vector<8x128xf32>
    %14 = arith.select %11, %12, %13 : vector<8x128xi1>, vector<8x128xf32>
    %cst_11 = arith.constant 5.000000e-01 : f32
    %cst_12 = arith.constant 0.000000e+00 : f32
    %15 = vector.broadcast %cst_11 : f32 to vector<8x128xf32>
    %16 = vector.broadcast %cst_12 : f32 to vector<8x128xf32>
    %17 = arith.select %11, %15, %16 : vector<8x128xi1>, vector<8x128xf32>
    %cst_13 = arith.constant 0.000000e+00 : f32
    %18 = vector.broadcast %cst_13 : f32 to vector<8x128xf32>
    %cst_14 = arith.constant 0.000000e+00 : f32
    %19 = vector.broadcast %cst_14 : f32 to vector<8x128xf32>
    %c0_i32 = arith.constant 0 : i32
    %20 = arith.index_cast %c0_i32 : i32 to index
    %c0_15 = arith.constant 0 : index
    %c0_16 = arith.constant 0 : index
    %21 = vector.load %arg7[%20, %c0_15, %c0_16] : memref<8x8x256xf32, #tpu.memory_space<vmem>>, vector<1x8x256xf32>
    %22 = vector.shape_cast %21 : vector<1x8x256xf32> to vector<8x256xf32>
    %c0_17 = arith.constant 0 : index
    %c0_18 = arith.constant 0 : index
    %23 = vector.load %arg2[%c0_17, %c0_18] : memref<128x256xf32, #tpu.memory_space<vmem>>, vector<128x256xf32>
    %cst_19 = arith.constant dense<0.000000e+00> : vector<8x256xf32>
    %24 = tpu.matmul %18, %23, %cst_19 {dimension_numbers = #tpu.dot_dimension_numbers<[1], [0], [0], [1], [0, 0, 1, 1], [], []>} : vector<8x128xf32>, vector<128x256xf32>, vector<8x256xf32> -> vector<8x256xf32>
    %25 = arith.addf %22, %24 : vector<8x256xf32>
    %26 = vector.extract_strided_slice %25 {offsets = [0, 0], sizes = [8, 128], strides = [1, 1]} : vector<8x256xf32> to vector<8x128xf32>
    %27 = vector.extract_strided_slice %25 {offsets = [0, 128], sizes = [8, 128], strides = [1, 1]} : vector<8x256xf32> to vector<8x128xf32>
    %cst_20 = arith.constant 5.000000e-01 : f32
    %28 = vector.broadcast %cst_20 : f32 to vector<8x128xf32>
    %29 = arith.mulf %28, %26 : vector<8x128xf32>
    %30 = math.tanh %29 : vector<8x128xf32>
    %cst_21 = arith.constant 5.000000e-01 : f32
    %31 = vector.broadcast %cst_21 : f32 to vector<8x128xf32>
    %32 = arith.mulf %31, %30 : vector<8x128xf32>
    %cst_22 = arith.constant 5.000000e-01 : f32
    %33 = vector.broadcast %cst_22 : f32 to vector<8x128xf32>
    %34 = arith.addf %32, %33 : vector<8x128xf32>
    %35 = arith.mulf %14, %27 : vector<8x128xf32>
    %36 = math.tanh %35 : vector<8x128xf32>
    %37 = arith.mulf %36, %14 : vector<8x128xf32>
    %38 = arith.addf %37, %17 : vector<8x128xf32>
    %39 = arith.mulf %34, %38 : vector<8x128xf32>
    %c64_i32_23 = arith.constant 64 : i32
    %40 = tpu.dynamic_rotate %39 by %c64_i32_23 dim 1 : vector<8x128xf32>, i32 -> vector<8x128xf32>
    %41 = arith.mulf %34, %19 : vector<8x128xf32>
    %42 = arith.addf %41, %40 : vector<8x128xf32>
    %43 = math.tanh %42 : vector<8x128xf32>
    %44 = arith.mulf %38, %43 : vector<8x128xf32>
    %c1_i32 = arith.constant 1 : i32
    %45 = arith.index_cast %c1_i32 : i32 to index
    %c0_24 = arith.constant 0 : index
    %c0_25 = arith.constant 0 : index
    %46 = vector.load %arg7[%45, %c0_24, %c0_25] : memref<8x8x256xf32, #tpu.memory_space<vmem>>, vector<1x8x256xf32>
    %47 = vector.shape_cast %46 : vector<1x8x256xf32> to vector<8x256xf32>
    %c0_26 = arith.constant 0 : index
    %c0_27 = arith.constant 0 : index
    %48 = vector.load %arg2[%c0_26, %c0_27] : memref<128x256xf32, #tpu.memory_space<vmem>>, vector<128x256xf32>
    %cst_28 = arith.constant dense<0.000000e+00> : vector<8x256xf32>
    %49 = tpu.matmul %44, %48, %cst_28 {dimension_numbers = #tpu.dot_dimension_numbers<[1], [0], [0], [1], [0, 0, 1, 1], [], []>} : vector<8x128xf32>, vector<128x256xf32>, vector<8x256xf32> -> vector<8x256xf32>
    %50 = arith.addf %47, %49 : vector<8x256xf32>
    %51 = vector.extract_strided_slice %50 {offsets = [0, 0], sizes = [8, 128], strides = [1, 1]} : vector<8x256xf32> to vector<8x128xf32>
    %52 = vector.extract_strided_slice %50 {offsets = [0, 128], sizes = [8, 128], strides = [1, 1]} : vector<8x256xf32> to vector<8x128xf32>
    %cst_29 = arith.constant 5.000000e-01 : f32
    %53 = vector.broadcast %cst_29 : f32 to vector<8x128xf32>
    %54 = arith.mulf %53, %51 : vector<8x128xf32>
    %55 = math.tanh %54 : vector<8x128xf32>
    %cst_30 = arith.constant 5.000000e-01 : f32
    %56 = vector.broadcast %cst_30 : f32 to vector<8x128xf32>
    %57 = arith.mulf %56, %55 : vector<8x128xf32>
    %cst_31 = arith.constant 5.000000e-01 : f32
    %58 = vector.broadcast %cst_31 : f32 to vector<8x128xf32>
    %59 = arith.addf %57, %58 : vector<8x128xf32>
    %60 = arith.mulf %14, %52 : vector<8x128xf32>
    %61 = math.tanh %60 : vector<8x128xf32>
    %62 = arith.mulf %61, %14 : vector<8x128xf32>
    %63 = arith.addf %62, %17 : vector<8x128xf32>
    %64 = arith.mulf %59, %63 : vector<8x128xf32>
    %c64_i32_32 = arith.constant 64 : i32
    %65 = tpu.dynamic_rotate %64 by %c64_i32_32 dim 1 : vector<8x128xf32>, i32 -> vector<8x128xf32>
    %66 = arith.mulf %59, %42 : vector<8x128xf32>
    %67 = arith.addf %66, %65 : vector<8x128xf32>
    %68 = math.tanh %67 : vector<8x128xf32>
    %69 = arith.mulf %63, %68 : vector<8x128xf32>
    %c2_i32 = arith.constant 2 : i32
    %70 = arith.index_cast %c2_i32 : i32 to index
    %c0_33 = arith.constant 0 : index
    %c0_34 = arith.constant 0 : index
    %71 = vector.load %arg7[%70, %c0_33, %c0_34] : memref<8x8x256xf32, #tpu.memory_space<vmem>>, vector<1x8x256xf32>
    %72 = vector.shape_cast %71 : vector<1x8x256xf32> to vector<8x256xf32>
    %c0_35 = arith.constant 0 : index
    %c0_36 = arith.constant 0 : index
    %73 = vector.load %arg2[%c0_35, %c0_36] : memref<128x256xf32, #tpu.memory_space<vmem>>, vector<128x256xf32>
    %cst_37 = arith.constant dense<0.000000e+00> : vector<8x256xf32>
    %74 = tpu.matmul %69, %73, %cst_37 {dimension_numbers = #tpu.dot_dimension_numbers<[1], [0], [0], [1], [0, 0, 1, 1], [], []>} : vector<8x128xf32>, vector<128x256xf32>, vector<8x256xf32> -> vector<8x256xf32>
    %75 = arith.addf %72, %74 : vector<8x256xf32>
    %76 = vector.extract_strided_slice %75 {offsets = [0, 0], sizes = [8, 128], strides = [1, 1]} : vector<8x256xf32> to vector<8x128xf32>
    %77 = vector.extract_strided_slice %75 {offsets = [0, 128], sizes = [8, 128], strides = [1, 1]} : vector<8x256xf32> to vector<8x128xf32>
    %cst_38 = arith.constant 5.000000e-01 : f32
    %78 = vector.broadcast %cst_38 : f32 to vector<8x128xf32>
    %79 = arith.mulf %78, %76 : vector<8x128xf32>
    %80 = math.tanh %79 : vector<8x128xf32>
    %cst_39 = arith.constant 5.000000e-01 : f32
    %81 = vector.broadcast %cst_39 : f32 to vector<8x128xf32>
    %82 = arith.mulf %81, %80 : vector<8x128xf32>
    %cst_40 = arith.constant 5.000000e-01 : f32
    %83 = vector.broadcast %cst_40 : f32 to vector<8x128xf32>
    %84 = arith.addf %82, %83 : vector<8x128xf32>
    %85 = arith.mulf %14, %77 : vector<8x128xf32>
    %86 = math.tanh %85 : vector<8x128xf32>
    %87 = arith.mulf %86, %14 : vector<8x128xf32>
    %88 = arith.addf %87, %17 : vector<8x128xf32>
    %89 = arith.mulf %84, %88 : vector<8x128xf32>
    %c64_i32_41 = arith.constant 64 : i32
    %90 = tpu.dynamic_rotate %89 by %c64_i32_41 dim 1 : vector<8x128xf32>, i32 -> vector<8x128xf32>
    %91 = arith.mulf %84, %67 : vector<8x128xf32>
    %92 = arith.addf %91, %90 : vector<8x128xf32>
    %93 = math.tanh %92 : vector<8x128xf32>
    %94 = arith.mulf %88, %93 : vector<8x128xf32>
    %c3_i32 = arith.constant 3 : i32
    %95 = arith.index_cast %c3_i32 : i32 to index
    %c0_42 = arith.constant 0 : index
    %c0_43 = arith.constant 0 : index
    %96 = vector.load %arg7[%95, %c0_42, %c0_43] : memref<8x8x256xf32, #tpu.memory_space<vmem>>, vector<1x8x256xf32>
    %97 = vector.shape_cast %96 : vector<1x8x256xf32> to vector<8x256xf32>
    %c0_44 = arith.constant 0 : index
    %c0_45 = arith.constant 0 : index
    %98 = vector.load %arg2[%c0_44, %c0_45] : memref<128x256xf32, #tpu.memory_space<vmem>>, vector<128x256xf32>
    %cst_46 = arith.constant dense<0.000000e+00> : vector<8x256xf32>
    %99 = tpu.matmul %94, %98, %cst_46 {dimension_numbers = #tpu.dot_dimension_numbers<[1], [0], [0], [1], [0, 0, 1, 1], [], []>} : vector<8x128xf32>, vector<128x256xf32>, vector<8x256xf32> -> vector<8x256xf32>
    %100 = arith.addf %97, %99 : vector<8x256xf32>
    %101 = vector.extract_strided_slice %100 {offsets = [0, 0], sizes = [8, 128], strides = [1, 1]} : vector<8x256xf32> to vector<8x128xf32>
    %102 = vector.extract_strided_slice %100 {offsets = [0, 128], sizes = [8, 128], strides = [1, 1]} : vector<8x256xf32> to vector<8x128xf32>
    %cst_47 = arith.constant 5.000000e-01 : f32
    %103 = vector.broadcast %cst_47 : f32 to vector<8x128xf32>
    %104 = arith.mulf %103, %101 : vector<8x128xf32>
    %105 = math.tanh %104 : vector<8x128xf32>
    %cst_48 = arith.constant 5.000000e-01 : f32
    %106 = vector.broadcast %cst_48 : f32 to vector<8x128xf32>
    %107 = arith.mulf %106, %105 : vector<8x128xf32>
    %cst_49 = arith.constant 5.000000e-01 : f32
    %108 = vector.broadcast %cst_49 : f32 to vector<8x128xf32>
    %109 = arith.addf %107, %108 : vector<8x128xf32>
    %110 = arith.mulf %14, %102 : vector<8x128xf32>
    %111 = math.tanh %110 : vector<8x128xf32>
    %112 = arith.mulf %111, %14 : vector<8x128xf32>
    %113 = arith.addf %112, %17 : vector<8x128xf32>
    %114 = arith.mulf %109, %113 : vector<8x128xf32>
    %c64_i32_50 = arith.constant 64 : i32
    %115 = tpu.dynamic_rotate %114 by %c64_i32_50 dim 1 : vector<8x128xf32>, i32 -> vector<8x128xf32>
    %116 = arith.mulf %109, %92 : vector<8x128xf32>
    %117 = arith.addf %116, %115 : vector<8x128xf32>
    %118 = math.tanh %117 : vector<8x128xf32>
    %119 = arith.mulf %113, %118 : vector<8x128xf32>
    %c4_i32 = arith.constant 4 : i32
    %120 = arith.index_cast %c4_i32 : i32 to index
    %c0_51 = arith.constant 0 : index
    %c0_52 = arith.constant 0 : index
    %121 = vector.load %arg7[%120, %c0_51, %c0_52] : memref<8x8x256xf32, #tpu.memory_space<vmem>>, vector<1x8x256xf32>
    %122 = vector.shape_cast %121 : vector<1x8x256xf32> to vector<8x256xf32>
    %c0_53 = arith.constant 0 : index
    %c0_54 = arith.constant 0 : index
    %123 = vector.load %arg2[%c0_53, %c0_54] : memref<128x256xf32, #tpu.memory_space<vmem>>, vector<128x256xf32>
    %cst_55 = arith.constant dense<0.000000e+00> : vector<8x256xf32>
    %124 = tpu.matmul %119, %123, %cst_55 {dimension_numbers = #tpu.dot_dimension_numbers<[1], [0], [0], [1], [0, 0, 1, 1], [], []>} : vector<8x128xf32>, vector<128x256xf32>, vector<8x256xf32> -> vector<8x256xf32>
    %125 = arith.addf %122, %124 : vector<8x256xf32>
    %126 = vector.extract_strided_slice %125 {offsets = [0, 0], sizes = [8, 128], strides = [1, 1]} : vector<8x256xf32> to vector<8x128xf32>
    %127 = vector.extract_strided_slice %125 {offsets = [0, 128], sizes = [8, 128], strides = [1, 1]} : vector<8x256xf32> to vector<8x128xf32>
    %cst_56 = arith.constant 5.000000e-01 : f32
    %128 = vector.broadcast %cst_56 : f32 to vector<8x128xf32>
    %129 = arith.mulf %128, %126 : vector<8x128xf32>
    %130 = math.tanh %129 : vector<8x128xf32>
    %cst_57 = arith.constant 5.000000e-01 : f32
    %131 = vector.broadcast %cst_57 : f32 to vector<8x128xf32>
    %132 = arith.mulf %131, %130 : vector<8x128xf32>
    %cst_58 = arith.constant 5.000000e-01 : f32
    %133 = vector.broadcast %cst_58 : f32 to vector<8x128xf32>
    %134 = arith.addf %132, %133 : vector<8x128xf32>
    %135 = arith.mulf %14, %127 : vector<8x128xf32>
    %136 = math.tanh %135 : vector<8x128xf32>
    %137 = arith.mulf %136, %14 : vector<8x128xf32>
    %138 = arith.addf %137, %17 : vector<8x128xf32>
    %139 = arith.mulf %134, %138 : vector<8x128xf32>
    %c64_i32_59 = arith.constant 64 : i32
    %140 = tpu.dynamic_rotate %139 by %c64_i32_59 dim 1 : vector<8x128xf32>, i32 -> vector<8x128xf32>
    %141 = arith.mulf %134, %117 : vector<8x128xf32>
    %142 = arith.addf %141, %140 : vector<8x128xf32>
    %143 = math.tanh %142 : vector<8x128xf32>
    %144 = arith.mulf %138, %143 : vector<8x128xf32>
    %c5_i32 = arith.constant 5 : i32
    %145 = arith.index_cast %c5_i32 : i32 to index
    %c0_60 = arith.constant 0 : index
    %c0_61 = arith.constant 0 : index
    %146 = vector.load %arg7[%145, %c0_60, %c0_61] : memref<8x8x256xf32, #tpu.memory_space<vmem>>, vector<1x8x256xf32>
    %147 = vector.shape_cast %146 : vector<1x8x256xf32> to vector<8x256xf32>
    %c0_62 = arith.constant 0 : index
    %c0_63 = arith.constant 0 : index
    %148 = vector.load %arg2[%c0_62, %c0_63] : memref<128x256xf32, #tpu.memory_space<vmem>>, vector<128x256xf32>
    %cst_64 = arith.constant dense<0.000000e+00> : vector<8x256xf32>
    %149 = tpu.matmul %144, %148, %cst_64 {dimension_numbers = #tpu.dot_dimension_numbers<[1], [0], [0], [1], [0, 0, 1, 1], [], []>} : vector<8x128xf32>, vector<128x256xf32>, vector<8x256xf32> -> vector<8x256xf32>
    %150 = arith.addf %147, %149 : vector<8x256xf32>
    %151 = vector.extract_strided_slice %150 {offsets = [0, 0], sizes = [8, 128], strides = [1, 1]} : vector<8x256xf32> to vector<8x128xf32>
    %152 = vector.extract_strided_slice %150 {offsets = [0, 128], sizes = [8, 128], strides = [1, 1]} : vector<8x256xf32> to vector<8x128xf32>
    %cst_65 = arith.constant 5.000000e-01 : f32
    %153 = vector.broadcast %cst_65 : f32 to vector<8x128xf32>
    %154 = arith.mulf %153, %151 : vector<8x128xf32>
    %155 = math.tanh %154 : vector<8x128xf32>
    %cst_66 = arith.constant 5.000000e-01 : f32
    %156 = vector.broadcast %cst_66 : f32 to vector<8x128xf32>
    %157 = arith.mulf %156, %155 : vector<8x128xf32>
    %cst_67 = arith.constant 5.000000e-01 : f32
    %158 = vector.broadcast %cst_67 : f32 to vector<8x128xf32>
    %159 = arith.addf %157, %158 : vector<8x128xf32>
    %160 = arith.mulf %14, %152 : vector<8x128xf32>
    %161 = math.tanh %160 : vector<8x128xf32>
    %162 = arith.mulf %161, %14 : vector<8x128xf32>
    %163 = arith.addf %162, %17 : vector<8x128xf32>
    %164 = arith.mulf %159, %163 : vector<8x128xf32>
    %c64_i32_68 = arith.constant 64 : i32
    %165 = tpu.dynamic_rotate %164 by %c64_i32_68 dim 1 : vector<8x128xf32>, i32 -> vector<8x128xf32>
    %166 = arith.mulf %159, %142 : vector<8x128xf32>
    %167 = arith.addf %166, %165 : vector<8x128xf32>
    %168 = math.tanh %167 : vector<8x128xf32>
    %169 = arith.mulf %163, %168 : vector<8x128xf32>
    %c6_i32 = arith.constant 6 : i32
    %170 = arith.index_cast %c6_i32 : i32 to index
    %c0_69 = arith.constant 0 : index
    %c0_70 = arith.constant 0 : index
    %171 = vector.load %arg7[%170, %c0_69, %c0_70] : memref<8x8x256xf32, #tpu.memory_space<vmem>>, vector<1x8x256xf32>
    %172 = vector.shape_cast %171 : vector<1x8x256xf32> to vector<8x256xf32>
    %c0_71 = arith.constant 0 : index
    %c0_72 = arith.constant 0 : index
    %173 = vector.load %arg2[%c0_71, %c0_72] : memref<128x256xf32, #tpu.memory_space<vmem>>, vector<128x256xf32>
    %cst_73 = arith.constant dense<0.000000e+00> : vector<8x256xf32>
    %174 = tpu.matmul %169, %173, %cst_73 {dimension_numbers = #tpu.dot_dimension_numbers<[1], [0], [0], [1], [0, 0, 1, 1], [], []>} : vector<8x128xf32>, vector<128x256xf32>, vector<8x256xf32> -> vector<8x256xf32>
    %175 = arith.addf %172, %174 : vector<8x256xf32>
    %176 = vector.extract_strided_slice %175 {offsets = [0, 0], sizes = [8, 128], strides = [1, 1]} : vector<8x256xf32> to vector<8x128xf32>
    %177 = vector.extract_strided_slice %175 {offsets = [0, 128], sizes = [8, 128], strides = [1, 1]} : vector<8x256xf32> to vector<8x128xf32>
    %cst_74 = arith.constant 5.000000e-01 : f32
    %178 = vector.broadcast %cst_74 : f32 to vector<8x128xf32>
    %179 = arith.mulf %178, %176 : vector<8x128xf32>
    %180 = math.tanh %179 : vector<8x128xf32>
    %cst_75 = arith.constant 5.000000e-01 : f32
    %181 = vector.broadcast %cst_75 : f32 to vector<8x128xf32>
    %182 = arith.mulf %181, %180 : vector<8x128xf32>
    %cst_76 = arith.constant 5.000000e-01 : f32
    %183 = vector.broadcast %cst_76 : f32 to vector<8x128xf32>
    %184 = arith.addf %182, %183 : vector<8x128xf32>
    %185 = arith.mulf %14, %177 : vector<8x128xf32>
    %186 = math.tanh %185 : vector<8x128xf32>
    %187 = arith.mulf %186, %14 : vector<8x128xf32>
    %188 = arith.addf %187, %17 : vector<8x128xf32>
    %189 = arith.mulf %184, %188 : vector<8x128xf32>
    %c64_i32_77 = arith.constant 64 : i32
    %190 = tpu.dynamic_rotate %189 by %c64_i32_77 dim 1 : vector<8x128xf32>, i32 -> vector<8x128xf32>
    %191 = arith.mulf %184, %167 : vector<8x128xf32>
    %192 = arith.addf %191, %190 : vector<8x128xf32>
    %193 = math.tanh %192 : vector<8x128xf32>
    %194 = arith.mulf %188, %193 : vector<8x128xf32>
    %c7_i32 = arith.constant 7 : i32
    %195 = arith.index_cast %c7_i32 : i32 to index
    %c0_78 = arith.constant 0 : index
    %c0_79 = arith.constant 0 : index
    %196 = vector.load %arg7[%195, %c0_78, %c0_79] : memref<8x8x256xf32, #tpu.memory_space<vmem>>, vector<1x8x256xf32>
    %197 = vector.shape_cast %196 : vector<1x8x256xf32> to vector<8x256xf32>
    %c0_80 = arith.constant 0 : index
    %c0_81 = arith.constant 0 : index
    %198 = vector.load %arg2[%c0_80, %c0_81] : memref<128x256xf32, #tpu.memory_space<vmem>>, vector<128x256xf32>
    %cst_82 = arith.constant dense<0.000000e+00> : vector<8x256xf32>
    %199 = tpu.matmul %194, %198, %cst_82 {dimension_numbers = #tpu.dot_dimension_numbers<[1], [0], [0], [1], [0, 0, 1, 1], [], []>} : vector<8x128xf32>, vector<128x256xf32>, vector<8x256xf32> -> vector<8x256xf32>
    %200 = arith.addf %197, %199 : vector<8x256xf32>
    %201 = vector.extract_strided_slice %200 {offsets = [0, 0], sizes = [8, 128], strides = [1, 1]} : vector<8x256xf32> to vector<8x128xf32>
    %202 = vector.extract_strided_slice %200 {offsets = [0, 128], sizes = [8, 128], strides = [1, 1]} : vector<8x256xf32> to vector<8x128xf32>
    %cst_83 = arith.constant 5.000000e-01 : f32
    %203 = vector.broadcast %cst_83 : f32 to vector<8x128xf32>
    %204 = arith.mulf %203, %201 : vector<8x128xf32>
    %205 = math.tanh %204 : vector<8x128xf32>
    %cst_84 = arith.constant 5.000000e-01 : f32
    %206 = vector.broadcast %cst_84 : f32 to vector<8x128xf32>
    %207 = arith.mulf %206, %205 : vector<8x128xf32>
    %cst_85 = arith.constant 5.000000e-01 : f32
    %208 = vector.broadcast %cst_85 : f32 to vector<8x128xf32>
    %209 = arith.addf %207, %208 : vector<8x128xf32>
    %210 = arith.mulf %14, %202 : vector<8x128xf32>
    %211 = math.tanh %210 : vector<8x128xf32>
    %212 = arith.mulf %211, %14 : vector<8x128xf32>
    %213 = arith.addf %212, %17 : vector<8x128xf32>
    %214 = arith.mulf %209, %213 : vector<8x128xf32>
    %c64_i32_86 = arith.constant 64 : i32
    %215 = tpu.dynamic_rotate %214 by %c64_i32_86 dim 1 : vector<8x128xf32>, i32 -> vector<8x128xf32>
    %216 = arith.mulf %209, %192 : vector<8x128xf32>
    %217 = arith.addf %216, %215 : vector<8x128xf32>
    %218 = math.tanh %217 : vector<8x128xf32>
    %219 = arith.mulf %213, %218 : vector<8x128xf32>
    %c8_i32 = arith.constant 8 : i32
    %cst_87 = arith.constant 0.000000e+00 : f32
    %220 = vector.broadcast %cst_87 : f32 to vector<8x128xf32>
    %221 = arith.maximumf %219, %220 : vector<8x128xf32>
    %c0_88 = arith.constant 0 : index
    %c0_89 = arith.constant 0 : index
    %222 = vector.load %arg4[%c0_88, %c0_89] : memref<128x128xf32, #tpu.memory_space<vmem>>, vector<128x128xf32>
    %cst_90 = arith.constant dense<0.000000e+00> : vector<8x128xf32>
    %223 = tpu.matmul %221, %222, %cst_90 {dimension_numbers = #tpu.dot_dimension_numbers<[1], [0], [0], [1], [0, 0, 1, 1], [], []>} : vector<8x128xf32>, vector<128x128xf32>, vector<8x128xf32> -> vector<8x128xf32>
    %c0_91 = arith.constant 0 : index
    %c0_92 = arith.constant 0 : index
    %224 = vector.load %arg5[%c0_91, %c0_92] : memref<1x128xf32, #tpu.memory_space<vmem>>, vector<1x128xf32>
    %225 = vector.broadcast %224 : vector<1x128xf32> to vector<8x128xf32>
    %226 = arith.addf %223, %225 : vector<8x128xf32>
    %c0_93 = arith.constant 0 : index
    %c0_94 = arith.constant 0 : index
    %227 = vector.load %arg6[%c0_93, %c0_94] : memref<8x128xf32, #tpu.memory_space<vmem>>, vector<8x128xf32>
    tpu.vector_store %arg6[%c0_93, %c0_94], %226 {strides = array<i32>} : memref<8x128xf32, #tpu.memory_space<vmem>>, vector<8x128xf32>,
    return
  }
}

</mosaic_0001>

<bundles_post_ra>
// kernel: state_lstm_forward.1
= control target key start
LH: loop header
LB: loop body
LE: loop exit
PB: predicated region body
PF: predicated region fallthrough
CT: control target
= control target key end

     0   :  { %11 = vsyncpa [#allocation4], 0  ;;  %s1843_s0 = inlined_call_operand.vmem [shape: f32[8,8,26], index: 0, kind: input, shape index: {}]   ;;  %s1844_s1 = inlined_call_operand.vmem [shape: f32[26,256], index: 1, kind: input, shape index: {}]   ;;  %s1845_s2 = inlined_call_operand.hbm [shape: f32[128,256], index: 2, kind: input, shape index: {}]   ;;  %s1846_s3 = inlined_call_operand.vmem [shape: f32[1,256], index: 3, kind: input, shape index: {}]   ;;  %s1847_s4 = inlined_call_operand.hbm [shape: f32[128,128], index: 4, kind: input, shape index: {}]   ;;  %s1848_s5 = inlined_call_operand.vmem [shape: f32[1,128], index: 5, kind: input, shape index: {}]   ;;  %s1849_s6 = inlined_call_operand.vmem [shape: f32[8,128], index: 6, kind: output, shape index: {}]  }
   0x1   :  { %12 = vsyncpa [#allocation6], 0  ;;  %s1270_s21 = smov [#allocation3]  }
   0x2   :  { %s22_s22 = sshll.u32 %s1270_s21, 4  ;;  %s23_s22 = int_to_ptr.vmem [resolvable:$true] %s22_s22 }
   0x3   :  { %s1234_s23 = scalar_lea.vmem %s23_s22, 4096  ;;  %p1239_p1 = scmp.lt.s32.totalorder %s23_s22, %s23_s22 }
   0x4   :  { %p1235_p0 = scmp.ne.s32.totalorder %s23_s22, %s1234_s23  ;;  %p1240_p2 = scmp.lt.s32.totalorder %s1234_s23, %s1234_s23 }
   0x6   :  { %p1241_p3 = por %p1240_p2, %p1239_p1 }
   0x8   :  { %p1242_p4 = pnand %p1241_p3, %p1235_p0 }
   0xa   :  { %1245 = shalt.err (!%p1242_p4)
}
   0xb   :  { %s1271_s24 = smov 256   ;;  %s1272_s25 = smov 16  }
   0xc   :  { %28 = dma.hbm_to_vmem [thread:$0]  %s1845_s2, 4096, %s23_s22, [#allocation4], %s1271_s24, %s1271_s24, %s1272_s25  }
   0xd   :  { %s1273_s28 = smov [#allocation5]  }
   0xe   :  { %s36_s29 = sshll.u32 %s1273_s28, 4  ;;  %s37_s29 = int_to_ptr.vmem [resolvable:$true] %s36_s29 }
   0xf   :  { %s1254_s30 = scalar_lea.vmem %s37_s29, 2048  ;;  %p1259_p6 = scmp.lt.s32.totalorder %s37_s29, %s37_s29 }
  0x10   :  { %p1255_p5 = scmp.ne.s32.totalorder %s37_s29, %s1254_s30  ;;  %p1260_p7 = scmp.lt.s32.totalorder %s1254_s30, %s1254_s30 }
  0x12   :  { %p1261_p8 = por %p1260_p7, %p1259_p6 }
  0x14   :  { %p1262_p9 = pnand %p1261_p8, %p1255_p5 }
  0x16   :  { %1265 = shalt.err (!%p1262_p9)
}
  0x17   :  { %s1274_s7 = smov 128   ;;  %s1275_s8 = smov 8  }
  0x18   :  { %42 = dma.hbm_to_vmem [thread:$0]  %s1847_s4, 2048, %s37_s29, [#allocation6], %s1274_s7, %s1274_s7, %s1275_s8  }
  0x19   :  { %1266 = dma.done.wait [#allocation4], 4096  }
  0x1a   :  { %1267 = vsyncadd [#allocation4], 4294963200 }
  0x1b   :  { %1268 = dma.done.wait [#allocation6], 2048  }
  0x1c   :  { %1269 = vsyncadd [#allocation6], 4294965248  ;;  %v1850_v0 = vmov 0.0   ;;  %v1323_v1 = vld [vmem:[#allocation3 + $0xf8] sm:$0xff]  ;;  %v1325_v2 = vld [vmem:[#allocation3 + $0xf0] sm:$0xff]  ;;  %vm104_vm0 = vcmask 1041408   ;;  %v69_v45 = vlaneseq }
  0x1d   :  { %175 = vmatprep.mubr.f32.mxu0 %v1850_v0  ;;  %343 = vmatprep.mubr.f32.mxu1 %v1850_v0  ;;  %v1327_v3 = vld [vmem:[#allocation3 + $0xe8] sm:$0xff]  ;;  %v1330_v4 = vld [vmem:[#allocation3 + $0xe0] sm:$0xff]  ;;  %v1333_v5 = vld [vmem:[#allocation3 + $0xd8] sm:$0xff]  ;;  %vm79_vm1 = vcmask 211968   ;;  %v1277_v59 = vmov 1.0   ;;  %s1278_s15 = smov 64  }
  0x1e   :  { %279 = vmatprep.subr.mxu1 %v1323_v1  ;;  %v1336_v6 = vld [vmem:[#allocation3 + $0xd0] sm:$0xff]  ;;  %v1339_v7 = vld [vmem:[#allocation3 + $0xc8] sm:$0xff]  ;;  %v1342_v8 = vld [vmem:[#allocation3 + $0xc0] sm:$0xff]  ;;  %v70_v46 = vshrl.u32 %v69_v45, 7  ;;  %v241_v52 = vand.u32 127, %v69_v45  ;;  %vm1279_vm3 = vmmov 0  }
  0x1f   :  { %280 = vmatpush1.msra.mxu1 %v1325_v2  ;;  %v1345_v9 = vld [vmem:[#allocation3 + $0xb8] sm:$0xff]  ;;  %v1351_v11 = vld [vmem:[#allocation3 + $0xb0] sm:$0xff]  ;;  %v1357_v13 = vld [vmem:[#allocation3 + $0xa8] sm:$0xff] }
  0x20   :  { %281 = vmatprep.subr.mxu1 %v1327_v3  ;;  %v66_v10 = vld [vmem:[%s1844_s1 + $0x38] sm:$0x3]  ;;  %v65_v12 = vld [vmem:[%s1844_s1 + $0x30] sm:$0x3]  ;;  %v64_v14 = vld [vmem:[%s1844_s1 + $0x28] sm:$0xff]  ;;  %v71_v47 = vsub.s32 0, %v70_v46 }
  0x21   :  { %282 = vmatpush1.msra.mxu1 %v1330_v4  ;;  %1105 = vmatprep.subr.msk.mxu0 %vm104_vm0, %v66_v10  ;;  %v63_v15 = vld [vmem:[%s1844_s1 + $0x20] sm:$0xff]  ;;  %v62_v17 = vld [vmem:[%s1844_s1 + $0x18] sm:$0xff]  ;;  %v61_v19 = vld [vmem:[%s1844_s1 + $0x10] sm:$0xff]  ;;  %v75_v50 = vsub.s32 1, %v70_v46  ;;  %vm242_vm2 = vcmp.lt.s32.totalorder %v241_v52, 64 }
  0x22   :  { %283 = vmatprep.subr.mxu1 %v1333_v5  ;;  %1106 = vmatpush1.msk.msra.mxu0 %vm104_vm0, %v65_v12  ;;  %v1366_v16 = vld [vmem:[#allocation3 + $0xa0] sm:$0xff]  ;;  %v1372_v18 = vld [vmem:[#allocation3 + $0x98] sm:$0xff]  ;;  %v60_v20 = vld [vmem:[%s1844_s1 + $0x8] sm:$0xff]  ;;  %v1541_v60 = vsel %vm242_vm2, 0.5, %v1277_v59 }
  0x23   :  { %284 = vmatpush1.msra.mxu1 %v1336_v6  ;;  %137 = vmatprep.subr.mxu0 %v64_v14  ;;  %v1381_v21 = vld [vmem:[#allocation3 + $0x90] sm:$0xff]  ;;  %v59_v22 = vld [vmem:[%s1844_s1] sm:$0xff]  ;;  %v1387_v23 = vld [vmem:[#allocation3 + $0x88] sm:$0xff] }
  0x24   :  { %285 = vmatprep.subr.mxu1 %v1339_v7  ;;  %138 = vmatpush1.msra.mxu0 %v63_v15  ;;  %v51_v24 = vld [vmem:[%s1843_s0] sm:$0xff]  ;;  %v1396_v26 = vld [vmem:[#allocation3 + $0x78] sm:$0xff]  ;;  %v1399_v27 = vld [vmem:[#allocation3 + $0x70] sm:$0xff] }
  0x25   :  { %286 = vmatpush1.msra.mxu1 %v1342_v8  ;;  %139 = vmatprep.subr.mxu0 %v62_v17  ;;  %v1393_v25 = vld [vmem:[#allocation3 + $0x80] sm:$0xff]  ;;  %v1403_v28 = vld [vmem:[#allocation3 + $0x68] sm:$0xff]  ;;  %v1411_v30 = vld [vmem:[#allocation3 + $0x58] sm:$0xff] }
  0x26   :  { %287 = vmatprep.subr.mxu1 %v1345_v9  ;;  %140 = vmatpush1.msra.mxu0 %v61_v19  ;;  %v1407_v29 = vld [vmem:[#allocation3 + $0x60] sm:$0xff]  ;;  %v1415_v31 = vld [vmem:[#allocation3 + $0x50] sm:$0xff]  ;;  %v1419_v32 = vld [vmem:[#allocation3 + $0x48] sm:$0xff] }
  0x27   :  { %288 = vmatpush1.msra.mxu1 %v1351_v11  ;;  %141 = vmatprep.subr.mxu0 %v60_v20  ;;  %v1423_v33 = vld [vmem:[#allocation3 + $0x40] sm:$0xff]  ;;  %v1427_v34 = vld [vmem:[#allocation3 + $0x38] sm:$0xff]  ;;  %v1431_v35 = vld [vmem:[#allocation3 + $0x30] sm:$0xff] }
  0x28   :  { %289 = vmatprep.subr.mxu1 %v1357_v13  ;;  %142 = vmatpush1.msra.mxu0 %v59_v22  ;;  %v1435_v36 = vld [vmem:[#allocation3 + $0x28] sm:$0xff]  ;;  %v1439_v37 = vld [vmem:[#allocation3 + $0x20] sm:$0xff]  ;;  %v1443_v38 = vld [vmem:[#allocation3 + $0x18] sm:$0xff]  ;;  %v1559_v22 = vsel %vm242_vm2, 0.5, %v1850_v0 }
  0x29   :  { %290 = vmatpush1.msra.mxu1 %v1366_v16  ;;  %1107 = vmatmul.mubr.msk.f32.vlgmr.msra.gmra.mxu0 %vm79_vm1, %v51_v24  ;;  %v1447_v39 = vld [vmem:[#allocation3 + $0x10] sm:$0xff]  ;;  %v1451_v40 = vld [vmem:[#allocation3 + $0x8] sm:$0xff]  ;;  %v1455_v41 = vld [vmem:[#allocation3] sm:$0xff] }
  0x2a   :  { %291 = vmatprep.subr.mxu1 %v1372_v18  ;;  %370 = vmatprep.subr.mxu0 %v1323_v1  ;;  %v52_v42 = vld [vmem:[%s1843_s0 + $0x8] sm:$0xff]  ;;  %v53_v43 = vld [vmem:[%s1843_s0 + $0x10] sm:$0xff]  ;;  %v54_v44 = vld [vmem:[%s1843_s0 + $0x18] sm:$0xff] }
  0x2b   :  { %292 = vmatpush1.msra.mxu1 %v1381_v21  ;;  %371 = vmatpush1.msra.mxu0 %v1325_v2  ;;  %v67_v48 = vld [vmem:[%s1846_s3] sm:$0x3]  ;;  %v56_v14 = vld [vmem:[%s1843_s0 + $0x28] sm:$0xff]  ;;  %v57_v19 = vld [vmem:[%s1843_s0 + $0x30] sm:$0xff] }
  0x2c   :  { %293 = vmatprep.subr.mxu1 %v1387_v23  ;;  %181 = vmatprep.mubr.f32.mxu0 %v1850_v0  ;;  %v1534_v49 = vrot.slane %v67_v48, %v71_v47  ;;  %v1537_v54 = vrot.slane %v67_v48, %v75_v50  ;;  %v55_v12 = vld [vmem:[%s1843_s0 + $0x20] sm:$0xff] }
  0x2d   :  { %294 = vmatpush1.msra.mxu1 %v1393_v25  ;;  %372 = vmatprep.subr.mxu0 %v1327_v3 }
  0x2e   :  { %295 = vmatprep.subr.mxu1 %v1396_v26  ;;  %373 = vmatpush1.msra.mxu0 %v1330_v4 }
  0x2f   :  { %296 = vmatpush1.msra.mxu1 %v1399_v27  ;;  %374 = vmatprep.subr.mxu0 %v1333_v5 }
  0x30   :  { %297 = vmatprep.subr.mxu1 %v1403_v28  ;;  %375 = vmatpush1.msra.mxu0 %v1336_v6 }
  0x31   :  { %298 = vmatpush1.msra.mxu1 %v1407_v29  ;;  %376 = vmatprep.subr.mxu0 %v1339_v7 }
  0x32   :  { %299 = vmatprep.subr.mxu1 %v1411_v30  ;;  %377 = vmatpush1.msra.mxu0 %v1342_v8 }
  0x33   :  { %300 = vmatpush1.msra.mxu1 %v1415_v31  ;;  %378 = vmatprep.subr.mxu0 %v1345_v9 }
  0x34   :  { %301 = vmatprep.subr.mxu1 %v1419_v32  ;;  %379 = vmatpush1.msra.mxu0 %v1351_v11 }
  0x35   :  { %302 = vmatpush1.msra.mxu1 %v1423_v33  ;;  %380 = vmatprep.subr.mxu0 %v1357_v13 }
  0x36   :  { %303 = vmatprep.subr.mxu1 %v1427_v34  ;;  %381 = vmatpush1.msra.mxu0 %v1366_v16 }
  0x37   :  { %304 = vmatpush1.msra.mxu1 %v1431_v35  ;;  %382 = vmatprep.subr.mxu0 %v1372_v18 }
  0x38   :  { %305 = vmatprep.subr.mxu1 %v1435_v36  ;;  %383 = vmatpush1.msra.mxu0 %v1381_v21 }
  0x39   :  { %306 = vmatpush1.msra.mxu1 %v1439_v37  ;;  %384 = vmatprep.subr.mxu0 %v1387_v23 }
  0x3a   :  { %307 = vmatprep.subr.mxu1 %v1443_v38  ;;  %385 = vmatpush1.msra.mxu0 %v1393_v25 }
  0x3b   :  { %308 = vmatpush1.msra.mxu1 %v1447_v39  ;;  %386 = vmatprep.subr.mxu0 %v1396_v26 }
  0x3c   :  { %309 = vmatprep.subr.mxu1 %v1451_v40  ;;  %387 = vmatpush1.msra.mxu0 %v1399_v27 }
  0x3d   :  { %310 = vmatpush1.msra.mxu1 %v1455_v41  ;;  %388 = vmatprep.subr.mxu0 %v1403_v28 }
  0x3e   :  { %344 = vmatmul.mubr.f32.vlgmr.msra.gmra.mxu1 %v1850_v0  ;;  %461 = vmatprep.subr.mxu1 %v1323_v1 }
  0x3f   :  { %462 = vmatpush1.msra.mxu1 %v1325_v2  ;;  %389 = vmatpush1.msra.mxu0 %v1407_v29 }
  0x40   :  { %463 = vmatprep.subr.mxu1 %v1327_v3  ;;  %390 = vmatprep.subr.mxu0 %v1411_v30 }
  0x41   :  { %464 = vmatpush1.msra.mxu1 %v1330_v4  ;;  %391 = vmatpush1.msra.mxu0 %v1415_v31 }
  0x42   :  { %465 = vmatprep.subr.mxu1 %v1333_v5  ;;  %392 = vmatprep.subr.mxu0 %v1419_v32 }
  0x43   :  { %466 = vmatpush1.msra.mxu1 %v1336_v6  ;;  %393 = vmatpush1.msra.mxu0 %v1423_v33 }
  0x44   :  { %467 = vmatprep.subr.mxu1 %v1339_v7  ;;  %394 = vmatprep.subr.mxu0 %v1427_v34 }
  0x45   :  { %468 = vmatpush1.msra.mxu1 %v1342_v8  ;;  %395 = vmatpush1.msra.mxu0 %v1431_v35 }
  0x46   :  { %469 = vmatprep.subr.mxu1 %v1345_v9  ;;  %396 = vmatprep.subr.mxu0 %v1435_v36 }
  0x47   :  { %470 = vmatpush1.msra.mxu1 %v1351_v11  ;;  %397 = vmatpush1.msra.mxu0 %v1439_v37 }
  0x48   :  { %471 = vmatprep.subr.mxu1 %v1357_v13  ;;  %398 = vmatprep.subr.mxu0 %v1443_v38 }
  0x49   :  { %472 = vmatpush1.msra.mxu1 %v1366_v16  ;;  %399 = vmatpush1.msra.mxu0 %v1447_v39 }
  0x4a   :  { %473 = vmatprep.subr.mxu1 %v1372_v18  ;;  %400 = vmatprep.subr.mxu0 %v1451_v40 }
  0x4b   :  { %474 = vmatpush1.msra.mxu1 %v1381_v21  ;;  %401 = vmatpush1.msra.mxu0 %v1455_v41 }
  0x4c   :  { %475 = vmatprep.subr.mxu1 %v1387_v23  ;;  %525 = vmatprep.mubr.f32.mxu1 %v1850_v0 }
  0x4d   :  { %476 = vmatpush1.msra.mxu1 %v1393_v25  ;;  %552 = vmatprep.subr.mxu0 %v1323_v1 }
  0x4e   :  { %477 = vmatprep.subr.mxu1 %v1396_v26  ;;  %1108 = vmatmul.mubr.msk.f32.gmra.mxu0 %vm79_vm1, %v52_v42 }
  0x4f   :  { %478 = vmatpush1.msra.mxu1 %v1399_v27  ;;  %187 = vmatprep.mubr.f32.mxu0 %v1850_v0 }
  0x50   :  { %479 = vmatprep.subr.mxu1 %v1403_v28 }
  0x51   :  { %480 = vmatpush1.msra.mxu1 %v1407_v29 }
  0x52   :  { %481 = vmatprep.subr.mxu1 %v1411_v30  ;;  %1109 = vmatmul.mubr.msk.f32.gmra.mxu0 %vm79_vm1, %v53_v43 }
  0x53   :  { %482 = vmatpush1.msra.mxu1 %v1415_v31  ;;  %193 = vmatprep.mubr.f32.mxu0 %v1850_v0 }
  0x54   :  { %483 = vmatprep.subr.mxu1 %v1419_v32 }
  0x55   :  { %484 = vmatpush1.msra.mxu1 %v1423_v33 }
  0x56   :  { %485 = vmatprep.subr.mxu1 %v1427_v34  ;;  %1110 = vmatmul.mubr.msk.f32.gmra.mxu0 %vm79_vm1, %v54_v44  ;;  %v58_v44 = vld [vmem:[%s1843_s0 + $0x38] sm:$0xff] }
  0x57   :  { %486 = vmatpush1.msra.mxu1 %v1431_v35  ;;  %199 = vmatprep.mubr.f32.mxu0 %v1850_v0 }
  0x58   :  { %487 = vmatprep.subr.mxu1 %v1435_v36 }
  0x59   :  { %488 = vmatpush1.msra.mxu1 %v1439_v37 }
  0x5a   :  { %489 = vmatprep.subr.mxu1 %v1443_v38  ;;  %1111 = vmatmul.mubr.msk.f32.gmra.mxu0 %vm79_vm1, %v55_v12 }
  0x5b   :  { %490 = vmatpush1.msra.mxu1 %v1447_v39  ;;  %205 = vmatprep.mubr.f32.mxu0 %v1850_v0 }
  0x5c   :  { %491 = vmatprep.subr.mxu1 %v1451_v40 }
  0x5d   :  { %492 = vmatpush1.msra.mxu1 %v1455_v41 }
  0x5e   :  { %643 = vmatprep.subr.mxu1 %v1323_v1  ;;  %1112 = vmatmul.mubr.msk.f32.gmra.mxu0 %vm79_vm1, %v56_v14 }
  0x5f   :  { %211 = vmatprep.mubr.f32.mxu0 %v1850_v0 }
  0x62   :  { %1113 = vmatmul.mubr.msk.f32.gmra.mxu0 %vm79_vm1, %v57_v19 }
  0x63   :  { %217 = vmatprep.mubr.f32.mxu0 %v1850_v0 }
  0x66   :  { %1114 = vmatmul.mubr.msk.f32.gmra.mxu0 %vm79_vm1, %v58_v44 }
  0x67   :  { %434 = vmatprep.mubr.f32.mxu0 %v1850_v0 }
  0xe9   :  { %v177_v51 = vpop.f32.mrf.mxu0 }
  0xea   :  { %v178_v53 = vadd.f32 %v177_v51, %v1534_v49 }
  0xeb   :  { %v179_v55 = vpop.f32.mrf.mxu0 }
  0xec   :  { %v180_v57 = vadd.f32 %v179_v55, %v1537_v54 }
  0xfe   :  { %v345_v56 = vpop.f32.mrf.mxu1 }
  0xff   :  { %v350_v58 = vadd.f32 %v345_v56, %v178_v53 }
 0x100   :  { %v347_v61 = vpop.f32.mrf.mxu1 }
 0x101   :  { %v352_v62 = vmul.f32 0.5, %v350_v58  ;;  %v351_v63 = vadd.f32 %v347_v61, %v180_v57 }
 0x103   :  { %1178 = vtanh.f32 %v352_v62  ;;  %v356_v10 = vmul.f32 %v351_v63, %v1541_v60 }
 0x105   :  { %1180 = vtanh.f32 %v356_v10 }
 0x10e   :  { %v183_v52 = vpop.f32.mrf.mxu0 }
 0x110   :  { %v1179_v15 = vpop.eup %1178  ;;  %v185_v53 = vpop.f32.mrf.mxu0 }
 0x111   :  { %v354_v17 = vmul.f32 0.5, %v1179_v15 }
 0x112   :  { %v1181_v20 = vpop.eup %1180  ;;  %v1607_v55 = vpop.f32.mrf.mxu0 }
 0x113   :  { %v358_v24 = vmul.f32 %v1181_v20, %v1541_v60  ;;  %v355_v42 = vadd.f32 0.5, %v354_v17  ;;  %v184_v17 = vadd.f32 %v183_v52, %v1534_v49  ;;  %v186_v20 = vadd.f32 %v185_v53, %v1537_v54 }
 0x114   :  { %v1609_v56 = vpop.f32.mrf.mxu0 }
 0x115   :  { %v359_v43 = vadd.f32 %v358_v24, %v1559_v22  ;;  %v363_v46 = vmul.f32 0.0, %v355_v42 }
 0x116   :  { %v1611_v57 = vpop.f32.mrf.mxu0 }
 0x117   :  { %v360_v45 = vmul.f32 %v359_v43, %v355_v42 }
 0x118   :  { %v1613_v58 = vpop.f32.mrf.mxu0 }
 0x119   :  { %361 = vrot.lane.b32.xlu0 %v360_v45, %s1278_s15 }
 0x11a   :  { %v1615_v59 = vpop.f32.mrf.mxu0 }
 0x11c   :  { %v1617_v61 = vpop.f32.mrf.mxu0 }
 0x11e   :  { %v1619_v62 = vpop.f32.mrf.mxu0 }
 0x120   :  { %v1621_v63 = vpop.f32.mrf.mxu0 }
 0x122   :  { %v1623_v10 = vpop.f32.mrf.mxu0 }
 0x124   :  { %v1625_v12 = vpop.f32.mrf.mxu0 }
 0x126   :  { %v1627_v14 = vpop.f32.mrf.mxu0 }
 0x128   :  { %v1629_v15 = vpop.f32.mrf.mxu0 }
 0x129   :  { %1852 = vst [vmem:[#allocation9_spill] sm:$0xff] %v1629_v15 }
 0x18b   :  { %v362_v47 = vpop.permute.xlu0 %361 }
 0x18c   :  { %v1571_v48 = vadd.f32 %v363_v46, %v362_v47 }
 0x18e   :  { %1182 = vtanh.f32 %v1571_v48 }
 0x19b   :  { %v1183_v50 = vpop.eup %1182 }
 0x19c   :  { %v366_v51 = vmul.f32 %v1183_v50, %v359_v43 }
 0x19e   :  { %435 = vmatmul.mubr.f32.vlgmr.msra.gmra.mxu0 %v366_v51 }
 0x19f   :  { %553 = vmatpush1.msra.mxu0 %v1325_v2  ;;  %616 = vmatprep.mubr.f32.mxu0 %v1850_v0 }
 0x1a0   :  { %554 = vmatprep.subr.mxu0 %v1327_v3 }
 0x1a1   :  { %555 = vmatpush1.msra.mxu0 %v1330_v4 }
 0x1a2   :  { %556 = vmatprep.subr.mxu0 %v1333_v5 }
 0x1a3   :  { %557 = vmatpush1.msra.mxu0 %v1336_v6 }
 0x1a4   :  { %558 = vmatprep.subr.mxu0 %v1339_v7 }
 0x1a5   :  { %559 = vmatpush1.msra.mxu0 %v1342_v8 }
 0x1a6   :  { %560 = vmatprep.subr.mxu0 %v1345_v9 }
 0x1a7   :  { %561 = vmatpush1.msra.mxu0 %v1351_v11 }
 0x1a8   :  { %562 = vmatprep.subr.mxu0 %v1357_v13 }
 0x1a9   :  { %563 = vmatpush1.msra.mxu0 %v1366_v16 }
 0x1aa   :  { %564 = vmatprep.subr.mxu0 %v1372_v18 }
 0x1ab   :  { %565 = vmatpush1.msra.mxu0 %v1381_v21 }
 0x1ac   :  { %566 = vmatprep.subr.mxu0 %v1387_v23 }
 0x1ad   :  { %567 = vmatpush1.msra.mxu0 %v1393_v25 }
 0x1ae   :  { %568 = vmatprep.subr.mxu0 %v1396_v26 }
 0x1af   :  { %569 = vmatpush1.msra.mxu0 %v1399_v27 }
 0x1b0   :  { %570 = vmatprep.subr.mxu0 %v1403_v28 }
 0x1b1   :  { %571 = vmatpush1.msra.mxu0 %v1407_v29 }
 0x1b2   :  { %572 = vmatprep.subr.mxu0 %v1411_v30 }
 0x1b3   :  { %573 = vmatpush1.msra.mxu0 %v1415_v31 }
 0x1b4   :  { %574 = vmatprep.subr.mxu0 %v1419_v32 }
 0x1b5   :  { %575 = vmatpush1.msra.mxu0 %v1423_v33 }
 0x1b6   :  { %576 = vmatprep.subr.mxu0 %v1427_v34 }
 0x1b7   :  { %577 = vmatpush1.msra.mxu0 %v1431_v35 }
 0x1b8   :  { %578 = vmatprep.subr.mxu0 %v1435_v36 }
 0x1b9   :  { %579 = vmatpush1.msra.mxu0 %v1439_v37 }
 0x1ba   :  { %580 = vmatprep.subr.mxu0 %v1443_v38 }
 0x1bb   :  { %581 = vmatpush1.msra.mxu0 %v1447_v39 }
 0x1bc   :  { %582 = vmatprep.subr.mxu0 %v1451_v40 }
 0x1bd   :  { %583 = vmatpush1.msra.mxu0 %v1455_v41 }
 0x1be   :  { %734 = vmatprep.subr.mxu0 %v1323_v1 }
 0x25e   :  { %v436_v19 = vpop.f32.mrf.mxu0 }
 0x25f   :  { %v441_v24 = vadd.f32 %v436_v19, %v184_v17 }
 0x260   :  { %v438_v42 = vpop.f32.mrf.mxu0 }
 0x261   :  { %v443_v43 = vmul.f32 0.5, %v441_v24  ;;  %v442_v44 = vadd.f32 %v438_v42, %v186_v20  ;;  %v1853_v42 = vmov 0.0  }
 0x263   :  { %1184 = vtanh.f32 %v443_v43  ;;  %v447_v45 = vmul.f32 %v442_v44, %v1541_v60 }
 0x265   :  { %1186 = vtanh.f32 %v447_v45 }
 0x270   :  { %v1185_v46 = vpop.eup %1184 }
 0x271   :  { %v445_v47 = vmul.f32 0.5, %v1185_v46 }
 0x272   :  { %v1187_v50 = vpop.eup %1186 }
 0x273   :  { %v449_v51 = vmul.f32 %v1187_v50, %v1541_v60  ;;  %v446_v0 = vadd.f32 0.5, %v445_v47 }
 0x275   :  { %v450_v15 = vadd.f32 %v449_v51, %v1559_v22  ;;  %v454_v53 = vmul.f32 %v446_v0, %v1571_v48 }
 0x277   :  { %v451_v52 = vmul.f32 %v450_v15, %v446_v0  ;;  %v190_v0 = vadd.f32 %v1607_v55, %v1534_v49 }
 0x279   :  { %452 = vrot.lane.b32.xlu0 %v451_v52, %s1278_s15 }
 0x2eb   :  { %v453_v17 = vpop.permute.xlu0 %452 }
 0x2ec   :  { %v455_v19 = vadd.f32 %v454_v53, %v453_v17 }
 0x2ee   :  { %1188 = vtanh.f32 %v455_v19 }
 0x2fb   :  { %v1189_v20 = vpop.eup %1188 }
 0x2fc   :  { %v457_v24 = vmul.f32 %v1189_v20, %v450_v15  ;;  %v192_v15 = vadd.f32 %v1609_v56, %v1537_v54 }
 0x2fe   :  { %526 = vmatmul.mubr.f32.vlgmr.msra.gmra.mxu1 %v457_v24 }
 0x2ff   :  { %644 = vmatpush1.msra.mxu1 %v1325_v2  ;;  %707 = vmatprep.mubr.f32.mxu1 %v1853_v42 }
 0x300   :  { %645 = vmatprep.subr.mxu1 %v1327_v3 }
 0x301   :  { %646 = vmatpush1.msra.mxu1 %v1330_v4 }
 0x302   :  { %647 = vmatprep.subr.mxu1 %v1333_v5 }
 0x303   :  { %648 = vmatpush1.msra.mxu1 %v1336_v6 }
 0x304   :  { %649 = vmatprep.subr.mxu1 %v1339_v7 }
 0x305   :  { %650 = vmatpush1.msra.mxu1 %v1342_v8 }
 0x306   :  { %651 = vmatprep.subr.mxu1 %v1345_v9 }
 0x307   :  { %652 = vmatpush1.msra.mxu1 %v1351_v11 }
 0x308   :  { %653 = vmatprep.subr.mxu1 %v1357_v13 }
 0x309   :  { %654 = vmatpush1.msra.mxu1 %v1366_v16 }
 0x30a   :  { %655 = vmatprep.subr.mxu1 %v1372_v18 }
 0x30b   :  { %656 = vmatpush1.msra.mxu1 %v1381_v21 }
 0x30c   :  { %657 = vmatprep.subr.mxu1 %v1387_v23 }
 0x30d   :  { %658 = vmatpush1.msra.mxu1 %v1393_v25 }
 0x30e   :  { %659 = vmatprep.subr.mxu1 %v1396_v26 }
 0x30f   :  { %660 = vmatpush1.msra.mxu1 %v1399_v27 }
 0x310   :  { %661 = vmatprep.subr.mxu1 %v1403_v28 }
 0x311   :  { %662 = vmatpush1.msra.mxu1 %v1407_v29 }
 0x312   :  { %663 = vmatprep.subr.mxu1 %v1411_v30 }
 0x313   :  { %664 = vmatpush1.msra.mxu1 %v1415_v31 }
 0x314   :  { %665 = vmatprep.subr.mxu1 %v1419_v32 }
 0x315   :  { %666 = vmatpush1.msra.mxu1 %v1423_v33 }
 0x316   :  { %667 = vmatprep.subr.mxu1 %v1427_v34 }
 0x317   :  { %668 = vmatpush1.msra.mxu1 %v1431_v35 }
 0x318   :  { %669 = vmatprep.subr.mxu1 %v1435_v36 }
 0x319   :  { %670 = vmatpush1.msra.mxu1 %v1439_v37 }
 0x31a   :  { %671 = vmatprep.subr.mxu1 %v1443_v38 }
 0x31b   :  { %672 = vmatpush1.msra.mxu1 %v1447_v39 }
 0x31c   :  { %673 = vmatprep.subr.mxu1 %v1451_v40 }
 0x31d   :  { %674 = vmatpush1.msra.mxu1 %v1455_v41 }
 0x31e   :  { %825 = vmatprep.subr.mxu1 %v1323_v1 }
 0x3be   :  { %v527_v48 = vpop.f32.mrf.mxu1 }
 0x3bf   :  { %v532_v43 = vadd.f32 %v527_v48, %v190_v0 }
 0x3c0   :  { %v529_v44 = vpop.f32.mrf.mxu1 }
 0x3c1   :  { %v534_v45 = vmul.f32 0.5, %v532_v43  ;;  %v533_v46 = vadd.f32 %v529_v44, %v192_v15  ;;  %v198_v44 = vadd.f32 %v1613_v58, %v1537_v54 }
 0x3c3   :  { %1190 = vtanh.f32 %v534_v45  ;;  %v538_v47 = vmul.f32 %v533_v46, %v1541_v60 }
 0x3c5   :  { %1192 = vtanh.f32 %v538_v47 }
 0x3d0   :  { %v1191_v50 = vpop.eup %1190 }
 0x3d1   :  { %v536_v51 = vmul.f32 0.5, %v1191_v50 }
 0x3d2   :  { %v1193_v52 = vpop.eup %1192 }
 0x3d3   :  { %v540_v53 = vmul.f32 %v1193_v52, %v1541_v60  ;;  %v537_v17 = vadd.f32 0.5, %v536_v51 }
 0x3d5   :  { %v541_v55 = vadd.f32 %v540_v53, %v1559_v22  ;;  %v545_v56 = vmul.f32 %v537_v17, %v455_v19  ;;  %v196_v19 = vadd.f32 %v1611_v57, %v1534_v49 }
 0x3d7   :  { %v542_v20 = vmul.f32 %v541_v55, %v537_v17 }
 0x3d9   :  { %543 = vrot.lane.b32.xlu1 %v542_v20, %s1278_s15 }
 0x44b   :  { %v544_v24 = vpop.permute.xlu1 %543 }
 0x44c   :  { %v546_v0 = vadd.f32 %v545_v56, %v544_v24 }
 0x44e   :  { %1194 = vtanh.f32 %v546_v0 }
 0x45b   :  { %v1195_v48 = vpop.eup %1194 }
 0x45c   :  { %v548_v15 = vmul.f32 %v1195_v48, %v541_v55 }
 0x45e   :  { %617 = vmatmul.mubr.f32.vlgmr.msra.gmra.mxu0 %v548_v15 }
 0x45f   :  { %735 = vmatpush1.msra.mxu0 %v1325_v2  ;;  %798 = vmatprep.mubr.f32.mxu0 %v1853_v42 }
 0x460   :  { %736 = vmatprep.subr.mxu0 %v1327_v3 }
 0x461   :  { %737 = vmatpush1.msra.mxu0 %v1330_v4 }
 0x462   :  { %738 = vmatprep.subr.mxu0 %v1333_v5 }
 0x463   :  { %739 = vmatpush1.msra.mxu0 %v1336_v6 }
 0x464   :  { %740 = vmatprep.subr.mxu0 %v1339_v7 }
 0x465   :  { %741 = vmatpush1.msra.mxu0 %v1342_v8 }
 0x466   :  { %742 = vmatprep.subr.mxu0 %v1345_v9 }
 0x467   :  { %743 = vmatpush1.msra.mxu0 %v1351_v11 }
 0x468   :  { %744 = vmatprep.subr.mxu0 %v1357_v13 }
 0x469   :  { %745 = vmatpush1.msra.mxu0 %v1366_v16 }
 0x46a   :  { %746 = vmatprep.subr.mxu0 %v1372_v18 }
 0x46b   :  { %747 = vmatpush1.msra.mxu0 %v1381_v21 }
 0x46c   :  { %748 = vmatprep.subr.mxu0 %v1387_v23 }
 0x46d   :  { %749 = vmatpush1.msra.mxu0 %v1393_v25 }
 0x46e   :  { %750 = vmatprep.subr.mxu0 %v1396_v26 }
 0x46f   :  { %751 = vmatpush1.msra.mxu0 %v1399_v27 }
 0x470   :  { %752 = vmatprep.subr.mxu0 %v1403_v28 }
 0x471   :  { %753 = vmatpush1.msra.mxu0 %v1407_v29 }
 0x472   :  { %754 = vmatprep.subr.mxu0 %v1411_v30 }
 0x473   :  { %755 = vmatpush1.msra.mxu0 %v1415_v31 }
 0x474   :  { %756 = vmatprep.subr.mxu0 %v1419_v32 }
 0x475   :  { %757 = vmatpush1.msra.mxu0 %v1423_v33 }
 0x476   :  { %758 = vmatprep.subr.mxu0 %v1427_v34 }
 0x477   :  { %759 = vmatpush1.msra.mxu0 %v1431_v35 }
 0x478   :  { %760 = vmatprep.subr.mxu0 %v1435_v36 }
 0x479   :  { %761 = vmatpush1.msra.mxu0 %v1439_v37 }
 0x47a   :  { %762 = vmatprep.subr.mxu0 %v1443_v38 }
 0x47b   :  { %763 = vmatpush1.msra.mxu0 %v1447_v39 }
 0x47c   :  { %764 = vmatprep.subr.mxu0 %v1451_v40 }
 0x47d   :  { %765 = vmatpush1.msra.mxu0 %v1455_v41 }
 0x47e   :  { %916 = vmatprep.subr.mxu0 %v1323_v1 }
 0x51e   :  { %v618_v43 = vpop.f32.mrf.mxu0 }
 0x51f   :  { %v623_v45 = vadd.f32 %v618_v43, %v196_v19  ;;  %v204_v43 = vadd.f32 %v1617_v61, %v1537_v54 }
 0x520   :  { %v620_v46 = vpop.f32.mrf.mxu0 }
 0x521   :  { %v625_v47 = vmul.f32 0.5, %v623_v45  ;;  %v624_v50 = vadd.f32 %v620_v46, %v198_v44 }
 0x523   :  { %1196 = vtanh.f32 %v625_v47  ;;  %v629_v51 = vmul.f32 %v624_v50, %v1541_v60 }
 0x525   :  { %1198 = vtanh.f32 %v629_v51 }
 0x530   :  { %v1197_v52 = vpop.eup %1196 }
 0x531   :  { %v627_v53 = vmul.f32 0.5, %v1197_v52 }
 0x532   :  { %v1199_v17 = vpop.eup %1198 }
 0x533   :  { %v631_v1 = vmul.f32 %v1199_v17, %v1541_v60  ;;  %v628_v55 = vadd.f32 0.5, %v627_v53 }
 0x535   :  { %v632_v57 = vadd.f32 %v631_v1, %v1559_v22  ;;  %v636_v58 = vmul.f32 %v628_v55, %v546_v0  ;;  %v202_v0 = vadd.f32 %v1615_v59, %v1534_v49 }
 0x537   :  { %v633_v20 = vmul.f32 %v632_v57, %v628_v55 }
 0x539   :  { %634 = vrot.lane.b32.xlu1 %v633_v20, %s1278_s15 }
 0x5ab   :  { %v635_v56 = vpop.permute.xlu1 %634 }
 0x5ac   :  { %v637_v24 = vadd.f32 %v636_v58, %v635_v56 }
 0x5ae   :  { %1200 = vtanh.f32 %v637_v24 }
 0x5bb   :  { %v1201_v48 = vpop.eup %1200 }
 0x5bc   :  { %v639_v15 = vmul.f32 %v1201_v48, %v632_v57 }
 0x5be   :  { %708 = vmatmul.mubr.f32.vlgmr.msra.gmra.mxu1 %v639_v15 }
 0x5bf   :  { %826 = vmatpush1.msra.mxu1 %v1325_v2  ;;  %889 = vmatprep.mubr.f32.mxu1 %v1853_v42 }
 0x5c0   :  { %827 = vmatprep.subr.mxu1 %v1327_v3 }
 0x5c1   :  { %828 = vmatpush1.msra.mxu1 %v1330_v4 }
 0x5c2   :  { %829 = vmatprep.subr.mxu1 %v1333_v5 }
 0x5c3   :  { %830 = vmatpush1.msra.mxu1 %v1336_v6 }
 0x5c4   :  { %831 = vmatprep.subr.mxu1 %v1339_v7 }
 0x5c5   :  { %832 = vmatpush1.msra.mxu1 %v1342_v8 }
 0x5c6   :  { %833 = vmatprep.subr.mxu1 %v1345_v9 }
 0x5c7   :  { %834 = vmatpush1.msra.mxu1 %v1351_v11 }
 0x5c8   :  { %835 = vmatprep.subr.mxu1 %v1357_v13 }
 0x5c9   :  { %836 = vmatpush1.msra.mxu1 %v1366_v16 }
 0x5ca   :  { %837 = vmatprep.subr.mxu1 %v1372_v18 }
 0x5cb   :  { %838 = vmatpush1.msra.mxu1 %v1381_v21 }
 0x5cc   :  { %839 = vmatprep.subr.mxu1 %v1387_v23 }
 0x5cd   :  { %840 = vmatpush1.msra.mxu1 %v1393_v25 }
 0x5ce   :  { %841 = vmatprep.subr.mxu1 %v1396_v26 }
 0x5cf   :  { %842 = vmatpush1.msra.mxu1 %v1399_v27 }
 0x5d0   :  { %843 = vmatprep.subr.mxu1 %v1403_v28 }
 0x5d1   :  { %844 = vmatpush1.msra.mxu1 %v1407_v29 }
 0x5d2   :  { %845 = vmatprep.subr.mxu1 %v1411_v30 }
 0x5d3   :  { %846 = vmatpush1.msra.mxu1 %v1415_v31 }
 0x5d4   :  { %847 = vmatprep.subr.mxu1 %v1419_v32 }
 0x5d5   :  { %848 = vmatpush1.msra.mxu1 %v1423_v33 }
 0x5d6   :  { %849 = vmatprep.subr.mxu1 %v1427_v34 }
 0x5d7   :  { %850 = vmatpush1.msra.mxu1 %v1431_v35 }
 0x5d8   :  { %851 = vmatprep.subr.mxu1 %v1435_v36 }
 0x5d9   :  { %852 = vmatpush1.msra.mxu1 %v1439_v37 }
 0x5da   :  { %853 = vmatprep.subr.mxu1 %v1443_v38 }
 0x5db   :  { %854 = vmatpush1.msra.mxu1 %v1447_v39 }
 0x5dc   :  { %855 = vmatprep.subr.mxu1 %v1451_v40 }
 0x5dd   :  { %856 = vmatpush1.msra.mxu1 %v1455_v41 }
 0x5de   :  { %1133 = vmatprep.subr.mxu1 %v1853_v42 }
 0x67e   :  { %v709_v19 = vpop.f32.mrf.mxu1 }
 0x67f   :  { %v714_v44 = vadd.f32 %v709_v19, %v202_v0 }
 0x680   :  { %v711_v45 = vpop.f32.mrf.mxu1 }
 0x681   :  { %v716_v46 = vmul.f32 0.5, %v714_v44  ;;  %v715_v47 = vadd.f32 %v711_v45, %v204_v43  ;;  %v1020_v43 = vld [vmem:[#allocation5 + $0x78] sm:$0xff]  ;;  %v1019_v44 = vld [vmem:[#allocation5 + $0x70] sm:$0xff]  ;;  %v1018_v45 = vld [vmem:[#allocation5 + $0x68] sm:$0xff] }
 0x683   :  { %1202 = vtanh.f32 %v716_v46  ;;  %v720_v50 = vmul.f32 %v715_v47, %v1541_v60  ;;  %v1017_v46 = vld [vmem:[#allocation5 + $0x60] sm:$0xff]  ;;  %v1016_v47 = vld [vmem:[#allocation5 + $0x58] sm:$0xff] }
 0x685   :  { %1204 = vtanh.f32 %v720_v50  ;;  %v1015_v50 = vld [vmem:[#allocation5 + $0x50] sm:$0xff] }
 0x690   :  { %v1203_v51 = vpop.eup %1202 }
 0x691   :  { %v718_v52 = vmul.f32 0.5, %v1203_v51  ;;  %v220_v51 = vadd.f32 %v1627_v14, %v1534_v49 }
 0x692   :  { %v1205_v53 = vpop.eup %1204 }
 0x693   :  { %v722_v17 = vmul.f32 %v1205_v53, %v1541_v60  ;;  %v719_v1 = vadd.f32 0.5, %v718_v52  ;;  %v1854_v53 = vld [vmem:[#allocation9_spill] sm:$0xff] }
 0x695   :  { %v723_v59 = vadd.f32 %v722_v17, %v1559_v22  ;;  %v727_v61 = vmul.f32 %v719_v1, %v637_v24  ;;  %v222_v17 = vadd.f32 %v1854_v53, %v1537_v54 }
 0x697   :  { %v724_v55 = vmul.f32 %v723_v59, %v719_v1 }
 0x699   :  { %725 = vrot.lane.b32.xlu0 %v724_v55, %s1278_s15 }
 0x70b   :  { %v726_v57 = vpop.permute.xlu0 %725 }
 0x70c   :  { %v728_v20 = vadd.f32 %v727_v61, %v726_v57 }
 0x70e   :  { %1206 = vtanh.f32 %v728_v20 }
 0x71b   :  { %v1207_v58 = vpop.eup %1206 }
 0x71c   :  { %v730_v56 = vmul.f32 %v1207_v58, %v723_v59  ;;  %v1013_v58 = vld [vmem:[#allocation5 + $0x40] sm:$0xff] }
 0x71e   :  { %799 = vmatmul.mubr.f32.vlgmr.msra.gmra.mxu0 %v730_v56  ;;  %v1012_v56 = vld [vmem:[#allocation5 + $0x38] sm:$0xff] }
 0x71f   :  { %917 = vmatpush1.msra.mxu0 %v1325_v2  ;;  %980 = vmatprep.mubr.f32.mxu0 %v1853_v42  ;;  %v208_v2 = vadd.f32 %v1619_v62, %v1534_v49 }
 0x720   :  { %918 = vmatprep.subr.mxu0 %v1327_v3 }
 0x721   :  { %919 = vmatpush1.msra.mxu0 %v1330_v4  ;;  %v210_v4 = vadd.f32 %v1621_v63, %v1537_v54 }
 0x722   :  { %920 = vmatprep.subr.mxu0 %v1333_v5 }
 0x723   :  { %921 = vmatpush1.msra.mxu0 %v1336_v6 }
 0x724   :  { %922 = vmatprep.subr.mxu0 %v1339_v7 }
 0x725   :  { %923 = vmatpush1.msra.mxu0 %v1342_v8 }
 0x726   :  { %924 = vmatprep.subr.mxu0 %v1345_v9 }
 0x727   :  { %925 = vmatpush1.msra.mxu0 %v1351_v11 }
 0x728   :  { %926 = vmatprep.subr.mxu0 %v1357_v13 }
 0x729   :  { %927 = vmatpush1.msra.mxu0 %v1366_v16 }
 0x72a   :  { %928 = vmatprep.subr.mxu0 %v1372_v18 }
 0x72b   :  { %929 = vmatpush1.msra.mxu0 %v1381_v21 }
 0x72c   :  { %930 = vmatprep.subr.mxu0 %v1387_v23 }
 0x72d   :  { %931 = vmatpush1.msra.mxu0 %v1393_v25 }
 0x72e   :  { %932 = vmatprep.subr.mxu0 %v1396_v26 }
 0x72f   :  { %933 = vmatpush1.msra.mxu0 %v1399_v27 }
 0x730   :  { %934 = vmatprep.subr.mxu0 %v1403_v28 }
 0x731   :  { %935 = vmatpush1.msra.mxu0 %v1407_v29 }
 0x732   :  { %936 = vmatprep.subr.mxu0 %v1411_v30 }
 0x733   :  { %937 = vmatpush1.msra.mxu0 %v1415_v31  ;;  %v214_v31 = vadd.f32 %v1623_v10, %v1534_v49 }
 0x734   :  { %938 = vmatprep.subr.mxu0 %v1419_v32 }
 0x735   :  { %939 = vmatpush1.msra.mxu0 %v1423_v33  ;;  %v216_v33 = vadd.f32 %v1625_v12, %v1537_v54  ;;  %v1011_v54 = vld [vmem:[#allocation5 + $0x30] sm:$0xff] }
 0x736   :  { %940 = vmatprep.subr.mxu0 %v1427_v34 }
 0x737   :  { %941 = vmatpush1.msra.mxu0 %v1431_v35 }
 0x738   :  { %942 = vmatprep.subr.mxu0 %v1435_v36 }
 0x739   :  { %943 = vmatpush1.msra.mxu0 %v1439_v37 }
 0x73a   :  { %944 = vmatprep.subr.mxu0 %v1443_v38 }
 0x73b   :  { %945 = vmatpush1.msra.mxu0 %v1447_v39 }
 0x73c   :  { %946 = vmatprep.subr.mxu0 %v1451_v40 }
 0x73d   :  { %947 = vmatpush1.msra.mxu0 %v1455_v41 }
 0x7de   :  { %v800_v3 = vpop.f32.mrf.mxu0 }
 0x7df   :  { %v805_v5 = vadd.f32 %v800_v3, %v208_v2  ;;  %v1010_v3 = vld [vmem:[#allocation5 + $0x28] sm:$0xff] }
 0x7e0   :  { %v802_v6 = vpop.f32.mrf.mxu0 }
 0x7e1   :  { %v807_v7 = vmul.f32 0.5, %v805_v5  ;;  %v806_v8 = vadd.f32 %v802_v6, %v210_v4  ;;  %v1009_v5 = vld [vmem:[#allocation5 + $0x20] sm:$0xff] }
 0x7e3   :  { %1208 = vtanh.f32 %v807_v7  ;;  %v811_v9 = vmul.f32 %v806_v8, %v1541_v60  ;;  %v1008_v8 = vld [vmem:[#allocation5 + $0x18] sm:$0xff] }
 0x7e5   :  { %1210 = vtanh.f32 %v811_v9 }
 0x7f0   :  { %v1209_v11 = vpop.eup %1208 }
 0x7f1   :  { %v809_v13 = vmul.f32 0.5, %v1209_v11  ;;  %v1007_v11 = vld [vmem:[#allocation5 + $0x10] sm:$0xff] }
 0x7f2   :  { %v1211_v16 = vpop.eup %1210 }
 0x7f3   :  { %v813_v18 = vmul.f32 %v1211_v16, %v1541_v60  ;;  %v810_v21 = vadd.f32 0.5, %v809_v13  ;;  %v1005_v13 = vld [vmem:[#allocation5] sm:$0xff] }
 0x7f5   :  { %v814_v23 = vadd.f32 %v813_v18, %v1559_v22  ;;  %v818_v26 = vmul.f32 %v810_v21, %v728_v20  ;;  %v1014_v20 = vld [vmem:[#allocation5 + $0x48] sm:$0xff] }
 0x7f7   :  { %v815_v25 = vmul.f32 %v814_v23, %v810_v21 }
 0x7f9   :  { %816 = vrot.lane.b32.xlu1 %v815_v25, %s1278_s15 }
 0x86b   :  { %v817_v27 = vpop.permute.xlu1 %816 }
 0x86c   :  { %v819_v28 = vadd.f32 %v818_v26, %v817_v27  ;;  %v1115_v26 = vld [vmem:[%s1848_s5] ss:$0 sm:$0xff] }
 0x86e   :  { %1212 = vtanh.f32 %v819_v28 }
 0x87b   :  { %v1213_v29 = vpop.eup %1212 }
 0x87c   :  { %v821_v30 = vmul.f32 %v1213_v29, %v814_v23 }
 0x87e   :  { %890 = vmatmul.mubr.f32.vlgmr.msra.gmra.mxu1 %v821_v30 }
 0x87f   :  { %1134 = vmatpush3.msra.mxu1 %v1020_v43  ;;  %1165 = vmatprep.mubr.msk.f32.mxu1 %vm1279_vm3, %v1853_v42 }
 0x880   :  { %1135 = vmatprep.subr.mxu1 %v1853_v42 }
 0x881   :  { %1136 = vmatpush3.msra.mxu1 %v1019_v44 }
 0x882   :  { %1137 = vmatprep.subr.mxu1 %v1853_v42 }
 0x883   :  { %1138 = vmatpush3.msra.mxu1 %v1018_v45 }
 0x884   :  { %1139 = vmatprep.subr.mxu1 %v1853_v42 }
 0x885   :  { %1140 = vmatpush3.msra.mxu1 %v1017_v46 }
 0x886   :  { %1141 = vmatprep.subr.mxu1 %v1853_v42 }
 0x887   :  { %1142 = vmatpush3.msra.mxu1 %v1016_v47 }
 0x888   :  { %1143 = vmatprep.subr.mxu1 %v1853_v42 }
 0x889   :  { %1144 = vmatpush3.msra.mxu1 %v1015_v50 }
 0x88a   :  { %1145 = vmatprep.subr.mxu1 %v1853_v42 }
 0x88b   :  { %1146 = vmatpush3.msra.mxu1 %v1014_v20 }
 0x88c   :  { %1147 = vmatprep.subr.mxu1 %v1853_v42 }
 0x88d   :  { %1148 = vmatpush3.msra.mxu1 %v1013_v58 }
 0x88e   :  { %1149 = vmatprep.subr.mxu1 %v1853_v42 }
 0x88f   :  { %1150 = vmatpush3.msra.mxu1 %v1012_v56 }
 0x890   :  { %1151 = vmatprep.subr.mxu1 %v1853_v42 }
 0x891   :  { %1152 = vmatpush3.msra.mxu1 %v1011_v54 }
 0x892   :  { %1153 = vmatprep.subr.mxu1 %v1853_v42 }
 0x893   :  { %1154 = vmatpush3.msra.mxu1 %v1010_v3 }
 0x894   :  { %1155 = vmatprep.subr.mxu1 %v1853_v42 }
 0x895   :  { %1156 = vmatpush3.msra.mxu1 %v1009_v5 }
 0x896   :  { %1157 = vmatprep.subr.mxu1 %v1853_v42 }
 0x897   :  { %1158 = vmatpush3.msra.mxu1 %v1008_v8 }
 0x898   :  { %1159 = vmatprep.subr.mxu1 %v1853_v42 }
 0x899   :  { %1160 = vmatpush3.msra.mxu1 %v1007_v11 }
 0x89a   :  { %1161 = vmatprep.subr.mxu1 %v1853_v42 }
 0x93e   :  { %v891_v32 = vpop.f32.mrf.mxu1 }
 0x93f   :  { %v896_v34 = vadd.f32 %v891_v32, %v214_v31 }
 0x940   :  { %v893_v35 = vpop.f32.mrf.mxu1 }
 0x941   :  { %v898_v36 = vmul.f32 0.5, %v896_v34  ;;  %v897_v37 = vadd.f32 %v893_v35, %v216_v33 }
 0x943   :  { %1214 = vtanh.f32 %v898_v36  ;;  %v902_v38 = vmul.f32 %v897_v37, %v1541_v60 }
 0x945   :  { %1216 = vtanh.f32 %v902_v38 }
 0x950   :  { %v1215_v39 = vpop.eup %1214 }
 0x951   :  { %v900_v40 = vmul.f32 0.5, %v1215_v39 }
 0x952   :  { %v1217_v41 = vpop.eup %1216 }
 0x953   :  { %v904_v62 = vmul.f32 %v1217_v41, %v1541_v60  ;;  %v901_v63 = vadd.f32 0.5, %v900_v40 }
 0x955   :  { %v905_v10 = vadd.f32 %v904_v62, %v1559_v22  ;;  %v909_v12 = vmul.f32 %v901_v63, %v819_v28 }
 0x957   :  { %v906_v24 = vmul.f32 %v905_v10, %v901_v63 }
 0x959   :  { %907 = vrot.lane.b32.xlu0 %v906_v24, %s1278_s15 }
 0x9cb   :  { %v908_v48 = vpop.permute.xlu0 %907 }
 0x9cc   :  { %v1809_v15 = vadd.f32 %v909_v12, %v908_v48 }
 0x9ce   :  { %1218 = vtanh.f32 %v1809_v15 }
 0x9db   :  { %v1219_v0 = vpop.eup %1218 }
 0x9dc   :  { %v912_v19 = vmul.f32 %v1219_v0, %v905_v10 }
 0x9de   :  { %981 = vmatmul.mubr.f32.vlgmr.msra.gmra.mxu0 %v912_v19 }
 0xa9e   :  { %v982_v52 = vpop.f32.mrf.mxu0 }
 0xa9f   :  { %v987_v1 = vadd.f32 %v982_v52, %v220_v51 }
 0xaa0   :  { %v984_v59 = vpop.f32.mrf.mxu0 }
 0xaa1   :  { %v989_v55 = vmul.f32 0.5, %v987_v1  ;;  %v988_v61 = vadd.f32 %v984_v59, %v222_v17 }
 0xaa3   :  { %1220 = vtanh.f32 %v989_v55  ;;  %v993_v57 = vmul.f32 %v988_v61, %v1541_v60 }
 0xaa5   :  { %1222 = vtanh.f32 %v993_v57 }
 0xab0   :  { %v1221_v49 = vpop.eup %1220 }
 0xab1   :  { %v991_v14 = vmul.f32 0.5, %v1221_v49 }
 0xab2   :  { %v1223_v2 = vpop.eup %1222 }
 0xab3   :  { %v995_v4 = vmul.f32 %v1223_v2, %v1541_v60  ;;  %v992_v6 = vadd.f32 0.5, %v991_v14  ;;  %v1006_v60 = vld [vmem:[#allocation5 + $0x8] sm:$0xff] }
 0xab4   :  { %1162 = vmatpush3.msra.mxu1 %v1006_v60 }
 0xab5   :  { %v996_v7 = vadd.f32 %v995_v4, %v1559_v22  ;;  %1163 = vmatprep.subr.mxu1 %v1853_v42  ;;  %v1000_v22 = vmul.f32 %v992_v6, %v1809_v15 }
 0xab6   :  { %1164 = vmatpush3.msra.mxu1 %v1005_v13 }
 0xab7   :  { %v997_v9 = vmul.f32 %v996_v7, %v992_v6 }
 0xab9   :  { %998 = vrot.lane.b32.xlu1 %v997_v9, %s1278_s15 }
 0xb2b   :  { %v999_v16 = vpop.permute.xlu1 %998 }
 0xb2c   :  { %v1001_v18 = vadd.f32 %v1000_v22, %v999_v16 }
 0xb2e   :  { %1224 = vtanh.f32 %v1001_v18 }
 0xb3b   :  { %v1225_v21 = vpop.eup %1224 }
 0xb3c   :  { %v1003_v23 = vmul.f32 %v1225_v21, %v996_v7 }
 0xb3e   :  { %v1004_v25 = vmax.f32 %v1003_v23, 0.0 }
 0xb40   :  { %1166 = vmatmul.mubr.f32.vlgmr.msra.gmra.mxu1 %v1004_v25 }
 0xc00   :  { %v1094_v27 = vpop.f32.mrf.mxu1 }
 0xc01   :  { %v1095_v28 = vadd.f32 %v1115_v26, %v1094_v27 }
 0xc02   :  { %v1167_v29 = vpop.f32.mrf.mxu1 }
 0xc03   :  { %1098 = vst [vmem:[%s1849_s6] sm:$0xff] %v1095_v28 }
 0xc04   :  { %1103 = vsyncpa [#allocation4], 1 }
 0xc05   :  { %1104 = vsyncpa [#allocation6], 1 }

</bundles_post_ra>
